<compile_context>
chip_gen: v7x
topology: tpu7x:2x2x1
jax: 0.10.0
libtpu: 0.0.40
codegen_flags: <defaults>
</compile_context>

<pallas_src>
import jax
import jax.numpy as jnp
from jax import lax
from jax.experimental import pallas as pl
from jax.experimental.pallas import tpu as pltpu  # noqa: F401  (used once tiled/gridded)

# ---- small config consistent with the module ----
HIDDEN = 32            # hidden_dim
HEADS = 4              # num_heads
PER_HEAD_DIM = 8       # per_head_dim
NUM_EDGE_TYPES = 2
HM = HEADS * PER_HEAD_DIM           # message size = 32
N_NODES = 16
E_PER_TYPE = 8
TE = NUM_EDGE_TYPES * E_PER_TYPE    # total edges = 16
QUERY_SCALE = PER_HEAD_DIM ** -0.5
NEG_BIG = -1e30                     # stands in for -inf in the segmented max


# ---------------------------------------------------------------------------
# Fused kernel: message MLP + attention scores + scatter softmax + aggregation.
# ---------------------------------------------------------------------------
def _rel_mha_mp_kernel(tgts_ref, src_ref, tgt_ref,
                       w_msg_src_ref, w_msg_tgt_ref, w_q_ref, w_k_ref,
                       b_edge_ref, head_sel_ref, out_ref):
    # tgts_ref      : (1, TE) int32          target node of each edge (type-major)
    # src_ref/tgt_ref: (TE, HIDDEN) bf16     gathered x[src] / x[tgt]
    # w_msg_src/tgt : (T*HIDDEN, HM) bf16    message weights split src/tgt halves
    # w_q_ref       : (T*HIDDEN, HM) bf16    query weights, pre-scaled by 1/sqrt(d)
    # w_k_ref       : (T*HIDDEN, HM) bf16    key weights
    # b_edge_ref    : (TE, HM) f32           per-edge message bias
    # head_sel_ref  : (HM, HEADS) bf16       one-hot head selector (d // phd == h)
    # out_ref       : (N_NODES, HM) f32
    f32 = jnp.float32
    bf16 = jnp.bfloat16

    # --- per-edge-type projections (Python-unrolled; bf16 MXU, f32 accum) ---
    msgs_pre_l, qk_l = [], []
    for t in range(NUM_EDGE_TYPES):
        rs = pl.ds(t * E_PER_TYPE, E_PER_TYPE)      # edge rows of this type
        ws = pl.ds(t * HIDDEN, HIDDEN)              # weight block of this type
        src_t = src_ref[rs, :]                      # (E, HIDDEN) bf16
        tgt_t = tgt_ref[rs, :]
        m = (jnp.dot(src_t, w_msg_src_ref[ws, :], preferred_element_type=f32) +
             jnp.dot(tgt_t, w_msg_tgt_ref[ws, :], preferred_element_type=f32))
        q = jnp.dot(tgt_t, w_q_ref[ws, :], preferred_element_type=f32)  # scale folded in
        k = jnp.dot(src_t, w_k_ref[ws, :], preferred_element_type=f32)
        msgs_pre_l.append(m)
        qk_l.append(q * k)
    msgs_pre = jnp.concatenate(msgs_pre_l, axis=0)                 # (TE, HM) f32
    qk = jnp.concatenate(qk_l, axis=0)                             # (TE, HM) f32
    msgs = jnp.maximum(msgs_pre + b_edge_ref[...], 0.0)            # (TE, HM) f32

    # --- per-head scores via the one-hot head selector (MXU, no reshapes) ---
    head_sel = head_sel_ref[...]                                   # (HM, H) bf16
    qk_b = qk.astype(bf16)
    scores = jnp.dot(qk_b, head_sel, preferred_element_type=f32)   # (TE, H)
    # Transposed copy (H, TE) so per-head rows are lane-dense for the seg-max.
    scoresT = lax.dot_general(head_sel, qk_b, (((0,), (1,)), ((), ())),
                              preferred_element_type=f32)          # (H, TE)

    # --- one-hot scatter matrix S[n, e] = 1 iff tgt(e) == n ---
    node_iota = lax.broadcasted_iota(jnp.int32, (N_NODES, TE), 0)
    is_tgt = tgts_ref[...] == node_iota                            # (N, TE) bool
    S_b = is_tgt.astype(bf16)                                      # (N, TE)
    mask_neg = jnp.where(is_tgt, f32(0.0), f32(NEG_BIG))           # (N, TE)

    # --- segmented max, 2D lane-dense (per-head unroll over H=4) ---
    h_iota = lax.broadcasted_iota(jnp.int32, (1, HEADS), 1)
    seg_max = jnp.zeros((N_NODES, HEADS), f32)
    for h in range(HEADS):
        cand = mask_neg + scoresT[h:h + 1, :]                      # (N, TE)
        col = jnp.max(cand, axis=1, keepdims=True)                 # (N, 1) lane reduce
        seg_max = seg_max + col * (h_iota == h).astype(f32)        # place in column h

    # --- segmented softmax: gathers/scatters are one-hot bf16 matmuls ---
    max_e = lax.dot_general(S_b, seg_max.astype(bf16), (((0,), (0,)), ((), ())),
                            preferred_element_type=f32)            # (TE, H)
    exp_sc = jnp.exp(scores - max_e)                               # (TE, H) f32
    denom = jnp.dot(S_b, exp_sc.astype(bf16),
                    preferred_element_type=f32)                    # (N, H)
    denom_e = lax.dot_general(S_b, denom.astype(bf16), (((0,), (0,)), ((), ())),
                              preferred_element_type=f32)          # (TE, H)
    probs = exp_sc * pl.reciprocal(denom_e, approx=True)           # EUP, frees VALU

    # --- expand head probs to per-dim columns, weight, scatter-sum to nodes ---
    probs_exp = lax.dot_general(probs.astype(bf16), head_sel,
                                (((1,), (1,)), ((), ())),
                                preferred_element_type=f32)        # (TE, HM)
    weighted = probs_exp * msgs                                    # (TE, HM) f32
    out_ref[...] = jnp.dot(S_b, weighted.astype(bf16),
                           preferred_element_type=f32)             # (N, HM)


# ---------------------------------------------------------------------------
# Wrapper: trace-time weight packing + tiny XLA gather glue + pallas_call.
# ---------------------------------------------------------------------------
def _pack_params(p):
    wm = p["w_msg"]                                                # (T, 2H, HM)
    w_msg_src = wm[:, :HIDDEN, :].reshape(NUM_EDGE_TYPES * HIDDEN, HM).astype(jnp.bfloat16)
    w_msg_tgt = wm[:, HIDDEN:, :].reshape(NUM_EDGE_TYPES * HIDDEN, HM).astype(jnp.bfloat16)
    w_q = (QUERY_SCALE * p["w_q"]).reshape(NUM_EDGE_TYPES * HIDDEN, HM).astype(jnp.bfloat16)
    w_k = p["w_k"].reshape(NUM_EDGE_TYPES * HIDDEN, HM).astype(jnp.bfloat16)
    # Per-edge bias (type-major; assumes equal edge counts per type).
    b_edge = jnp.repeat(p["b_msg"], E_PER_TYPE, axis=0).astype(jnp.float32)   # (TE, HM)
    # One-hot head selector: head_sel[d, h] = 1 iff d // per_head_dim == h.
    d_idx = jnp.arange(HM)[:, None] // PER_HEAD_DIM
    h_idx = jnp.arange(HEADS)[None, :]
    head_sel = (d_idx == h_idx).astype(jnp.bfloat16)               # (HM, H)
    return w_msg_src, w_msg_tgt, w_q, w_k, b_edge, head_sel


def _gather_edge_features(x, adj_lists):
    # TODO(synk): at scale, scalar-prefetch srcs/tgts and DMA-gather node rows
    # in-kernel instead of this XLA gather glue.
    srcs = jnp.concatenate([a[:, 0] for a in adj_lists]).astype(jnp.int32)
    tgts = jnp.concatenate([a[:, 1] for a in adj_lists]).astype(jnp.int32)
    src_x = x[srcs].astype(jnp.bfloat16)                           # (TE, HIDDEN)
    tgt_x = x[tgts].astype(jnp.bfloat16)                           # (TE, HIDDEN)
    return src_x, tgt_x, tgts.reshape(1, TE)


def rel_mha_mp(x, adj_lists, p):
    w_msg_src, w_msg_tgt, w_q, w_k, b_edge, head_sel = _pack_params(p)
    src_x, tgt_x, tgts2d = _gather_edge_features(x, adj_lists)
    return pl.pallas_call(
        _rel_mha_mp_kernel,
        out_shape=jax.ShapeDtypeStruct((N_NODES, HM), jnp.float32),
    )(tgts2d, src_x, tgt_x, w_msg_src, w_msg_tgt, w_q, w_k, b_edge, head_sel)


# ---------------------------------------------------------------------------
# Pure-JAX f32 reference mirroring the PyTorch forward.
# ---------------------------------------------------------------------------
def reference(x, adj_lists, p):
    msgs_l, scores_l, tgts_l = [], [], []
    for t, adj in enumerate(adj_lists):
        s, tg = adj[:, 0], adj[:, 1]
        src_r, tgt_r = x[s], x[tg]
        m = jnp.concatenate([src_r, tgt_r], axis=1) @ p["w_msg"][t] + p["b_msg"][t]
        m = jnp.maximum(m, 0.0).reshape(-1, HEADS, PER_HEAD_DIM)
        q = (QUERY_SCALE * (tgt_r @ p["w_q"][t])).reshape(-1, HEADS, PER_HEAD_DIM)
        k = (src_r @ p["w_k"][t]).reshape(-1, HEADS, PER_HEAD_DIM)
        scores_l.append(jnp.einsum('ehd,ehd->eh', q, k))
        msgs_l.append(m)
        tgts_l.append(tg)
    all_m = jnp.concatenate(msgs_l, 0)                             # (TE, H, phd)
    all_sc = jnp.concatenate(scores_l, 0)                          # (TE, H)
    all_tg = jnp.concatenate(tgts_l, 0)                            # (TE,)
    m_max = jnp.full((N_NODES, HEADS), -jnp.inf).at[all_tg].max(all_sc)
    e = jnp.exp(all_sc - m_max[all_tg])
    denom = jnp.zeros((N_NODES, HEADS)).at[all_tg].add(e)
    probs = e / denom[all_tg]
    weighted = probs[:, :, None] * all_m
    agg = jnp.zeros((N_NODES, HEADS, PER_HEAD_DIM)).at[all_tg].add(weighted)
    return agg.reshape(N_NODES, HM)


def init_params(key):
    ks = jax.random.split(key, 4)
    s = 0.1
    return dict(
        w_msg=s * jax.random.normal(ks[0], (NUM_EDGE_TYPES, 2 * HIDDEN, HM), jnp.float32),
        b_msg=s * jax.random.normal(ks[1], (NUM_EDGE_TYPES, HM), jnp.float32),
        w_q=s * jax.random.normal(ks[2], (NUM_EDGE_TYPES, HIDDEN, HM), jnp.float32),
        w_k=s * jax.random.normal(ks[3], (NUM_EDGE_TYPES, HIDDEN, HM), jnp.float32),
    )


if __name__ == "__main__":
    key = jax.random.PRNGKey(0)
    k_x, k_e, k_p = jax.random.split(key, 3)

    x = jax.random.normal(k_x, (N_NODES, HIDDEN), jnp.float32)
    adj_lists = [
        jax.random.randint(jax.random.fold_in(k_e, t), (E_PER_TYPE, 2), 0, N_NODES, jnp.int32)
        for t in range(NUM_EDGE_TYPES)
    ]
    params = init_params(k_p)

    fwd = jax.jit(rel_mha_mp)
    out = jax.block_until_ready(fwd(x, adj_lists, params))

    ref = reference(x, adj_lists, params)
    assert out.shape == (N_NODES, HM)
    assert bool(jnp.all(jnp.isfinite(out)))
    # Looser tolerance: MXU operands are bf16 (f32 accumulation) per the perf review.
    assert bool(jnp.allclose(out, ref, rtol=5e-2, atol=5e-3)), (
        float(jnp.max(jnp.abs(out - ref))))

    print("KERNEL_OK")
</pallas_src>

<mosaic_0001>
module attributes {stable_mosaic.version = 11 : i64} {
  func.func @_rel_mha_mp_kernel(%arg0: memref<1x16xi32, #tpu.memory_space<vmem>>, %arg1: memref<16x32xbf16, #tpu.memory_space<vmem>>, %arg2: memref<16x32xbf16, #tpu.memory_space<vmem>>, %arg3: memref<64x32xbf16, #tpu.memory_space<vmem>>, %arg4: memref<64x32xbf16, #tpu.memory_space<vmem>>, %arg5: memref<64x32xbf16, #tpu.memory_space<vmem>>, %arg6: memref<64x32xbf16, #tpu.memory_space<vmem>>, %arg7: memref<16x32xf32, #tpu.memory_space<vmem>>, %arg8: memref<32x4xbf16, #tpu.memory_space<vmem>>, %arg9: memref<16x32xf32, #tpu.memory_space<vmem>>) attributes {dimension_semantics = [], scalar_prefetch = 0 : i64, scratch_operands = 0 : i64, tpu.core_type = #tpu.core_type<tc>} {
    %c0 = arith.constant 0 : index
    %c0_0 = arith.constant 0 : index
    %0 = vector.load %arg1[%c0, %c0_0] : memref<16x32xbf16, #tpu.memory_space<vmem>>, vector<8x32xbf16>
    %c0_1 = arith.constant 0 : index
    %c0_2 = arith.constant 0 : index
    %1 = vector.load %arg2[%c0_1, %c0_2] : memref<16x32xbf16, #tpu.memory_space<vmem>>, vector<8x32xbf16>
    %c0_3 = arith.constant 0 : index
    %c0_4 = arith.constant 0 : index
    %2 = vector.load %arg3[%c0_3, %c0_4] : memref<64x32xbf16, #tpu.memory_space<vmem>>, vector<32x32xbf16>
    %cst = arith.constant dense<0.000000e+00> : vector<8x32xf32>
    %3 = tpu.matmul %0, %2, %cst {dimension_numbers = #tpu.dot_dimension_numbers<[1], [0], [0], [1], [0, 0, 1, 1], [], []>} : vector<8x32xbf16>, vector<32x32xbf16>, vector<8x32xf32> -> vector<8x32xf32>
    %c0_5 = arith.constant 0 : index
    %c0_6 = arith.constant 0 : index
    %4 = vector.load %arg4[%c0_5, %c0_6] : memref<64x32xbf16, #tpu.memory_space<vmem>>, vector<32x32xbf16>
    %cst_7 = arith.constant dense<0.000000e+00> : vector<8x32xf32>
    %5 = tpu.matmul %1, %4, %cst_7 {dimension_numbers = #tpu.dot_dimension_numbers<[1], [0], [0], [1], [0, 0, 1, 1], [], []>} : vector<8x32xbf16>, vector<32x32xbf16>, vector<8x32xf32> -> vector<8x32xf32>
    %6 = arith.addf %3, %5 : vector<8x32xf32>
    %c0_8 = arith.constant 0 : index
    %c0_9 = arith.constant 0 : index
    %7 = vector.load %arg5[%c0_8, %c0_9] : memref<64x32xbf16, #tpu.memory_space<vmem>>, vector<32x32xbf16>
    %cst_10 = arith.constant dense<0.000000e+00> : vector<8x32xf32>
    %8 = tpu.matmul %1, %7, %cst_10 {dimension_numbers = #tpu.dot_dimension_numbers<[1], [0], [0], [1], [0, 0, 1, 1], [], []>} : vector<8x32xbf16>, vector<32x32xbf16>, vector<8x32xf32> -> vector<8x32xf32>
    %c0_11 = arith.constant 0 : index
    %c0_12 = arith.constant 0 : index
    %9 = vector.load %arg6[%c0_11, %c0_12] : memref<64x32xbf16, #tpu.memory_space<vmem>>, vector<32x32xbf16>
    %cst_13 = arith.constant dense<0.000000e+00> : vector<8x32xf32>
    %10 = tpu.matmul %0, %9, %cst_13 {dimension_numbers = #tpu.dot_dimension_numbers<[1], [0], [0], [1], [0, 0, 1, 1], [], []>} : vector<8x32xbf16>, vector<32x32xbf16>, vector<8x32xf32> -> vector<8x32xf32>
    %11 = arith.mulf %8, %10 : vector<8x32xf32>
    %c8 = arith.constant 8 : index
    %c0_14 = arith.constant 0 : index
    %12 = vector.load %arg1[%c8, %c0_14] : memref<16x32xbf16, #tpu.memory_space<vmem>>, vector<8x32xbf16>
    %c8_15 = arith.constant 8 : index
    %c0_16 = arith.constant 0 : index
    %13 = vector.load %arg2[%c8_15, %c0_16] : memref<16x32xbf16, #tpu.memory_space<vmem>>, vector<8x32xbf16>
    %c32 = arith.constant 32 : index
    %c0_17 = arith.constant 0 : index
    %14 = vector.load %arg3[%c32, %c0_17] : memref<64x32xbf16, #tpu.memory_space<vmem>>, vector<32x32xbf16>
    %cst_18 = arith.constant dense<0.000000e+00> : vector<8x32xf32>
    %15 = tpu.matmul %12, %14, %cst_18 {dimension_numbers = #tpu.dot_dimension_numbers<[1], [0], [0], [1], [0, 0, 1, 1], [], []>} : vector<8x32xbf16>, vector<32x32xbf16>, vector<8x32xf32> -> vector<8x32xf32>
    %c32_19 = arith.constant 32 : index
    %c0_20 = arith.constant 0 : index
    %16 = vector.load %arg4[%c32_19, %c0_20] : memref<64x32xbf16, #tpu.memory_space<vmem>>, vector<32x32xbf16>
    %cst_21 = arith.constant dense<0.000000e+00> : vector<8x32xf32>
    %17 = tpu.matmul %13, %16, %cst_21 {dimension_numbers = #tpu.dot_dimension_numbers<[1], [0], [0], [1], [0, 0, 1, 1], [], []>} : vector<8x32xbf16>, vector<32x32xbf16>, vector<8x32xf32> -> vector<8x32xf32>
    %18 = arith.addf %15, %17 : vector<8x32xf32>
    %c32_22 = arith.constant 32 : index
    %c0_23 = arith.constant 0 : index
    %19 = vector.load %arg5[%c32_22, %c0_23] : memref<64x32xbf16, #tpu.memory_space<vmem>>, vector<32x32xbf16>
    %cst_24 = arith.constant dense<0.000000e+00> : vector<8x32xf32>
    %20 = tpu.matmul %13, %19, %cst_24 {dimension_numbers = #tpu.dot_dimension_numbers<[1], [0], [0], [1], [0, 0, 1, 1], [], []>} : vector<8x32xbf16>, vector<32x32xbf16>, vector<8x32xf32> -> vector<8x32xf32>
    %c32_25 = arith.constant 32 : index
    %c0_26 = arith.constant 0 : index
    %21 = vector.load %arg6[%c32_25, %c0_26] : memref<64x32xbf16, #tpu.memory_space<vmem>>, vector<32x32xbf16>
    %cst_27 = arith.constant dense<0.000000e+00> : vector<8x32xf32>
    %22 = tpu.matmul %12, %21, %cst_27 {dimension_numbers = #tpu.dot_dimension_numbers<[1], [0], [0], [1], [0, 0, 1, 1], [], []>} : vector<8x32xbf16>, vector<32x32xbf16>, vector<8x32xf32> -> vector<8x32xf32>
    %23 = arith.mulf %20, %22 : vector<8x32xf32>
    %24 = tpu.concatenate %6, %18 in 0 : vector<8x32xf32>, vector<8x32xf32> -> vector<16x32xf32>
    %25 = tpu.concatenate %11, %23 in 0 : vector<8x32xf32>, vector<8x32xf32> -> vector<16x32xf32>
    %c0_28 = arith.constant 0 : index
    %c0_29 = arith.constant 0 : index
    %26 = vector.load %arg7[%c0_28, %c0_29] : memref<16x32xf32, #tpu.memory_space<vmem>>, vector<16x32xf32>
    %27 = arith.addf %24, %26 : vector<16x32xf32>
    %cst_30 = arith.constant 0.000000e+00 : f32
    %28 = vector.broadcast %cst_30 : f32 to vector<16x32xf32>
    %29 = arith.maximumf %27, %28 : vector<16x32xf32>
    %c0_31 = arith.constant 0 : index
    %c0_32 = arith.constant 0 : index
    %30 = vector.load %arg8[%c0_31, %c0_32] : memref<32x4xbf16, #tpu.memory_space<vmem>>, vector<32x4xbf16>
    %31 = arith.truncf %25 : vector<16x32xf32> to vector<16x32xbf16>
    %cst_33 = arith.constant dense<0.000000e+00> : vector<16x4xf32>
    %32 = tpu.matmul %31, %30, %cst_33 {dimension_numbers = #tpu.dot_dimension_numbers<[1], [0], [0], [1], [0, 0, 1, 1], [], []>} : vector<16x32xbf16>, vector<32x4xbf16>, vector<16x4xf32> -> vector<16x4xf32>
    %cst_34 = arith.constant dense<0.000000e+00> : vector<4x16xf32>
    %33 = tpu.matmul %30, %31, %cst_34 {dimension_numbers = #tpu.dot_dimension_numbers<[0], [1], [1], [0], [0, 1, 1, 0], [], []>} : vector<32x4xbf16>, vector<16x32xbf16>, vector<4x16xf32> -> vector<4x16xf32>
    %34 = tpu.iota {dimensions = array<i32: 0>} : vector<16x16xi32>
    %c0_35 = arith.constant 0 : index
    %c0_36 = arith.constant 0 : index
    %35 = vector.load %arg0[%c0_35, %c0_36] : memref<1x16xi32, #tpu.memory_space<vmem>>, vector<1x16xi32>
    %36 = vector.broadcast %35 : vector<1x16xi32> to vector<16x16xi32>
    %37 = arith.cmpi eq, %36, %34 : vector<16x16xi32>
    %38 = arith.extui %37 : vector<16x16xi1> to vector<16x16xi32>
    %39 = arith.sitofp %38 : vector<16x16xi32> to vector<16x16xf32>
    %40 = arith.truncf %39 : vector<16x16xf32> to vector<16x16xbf16>
    %cst_37 = arith.constant 0.000000e+00 : f32
    %cst_38 = arith.constant -1.000000e+30 : f32
    %41 = vector.broadcast %cst_37 : f32 to vector<16x16xf32>
    %42 = vector.broadcast %cst_38 : f32 to vector<16x16xf32>
    %43 = arith.select %37, %41, %42 : vector<16x16xi1>, vector<16x16xf32>
    %44 = tpu.iota {dimensions = array<i32: 1>} : vector<1x4xi32>
    %cst_39 = arith.constant 0.000000e+00 : f32
    %45 = vector.broadcast %cst_39 : f32 to vector<16x4xf32>
    %46 = vector.extract_strided_slice %33 {offsets = [0, 0], sizes = [1, 16], strides = [1, 1]} : vector<4x16xf32> to vector<1x16xf32>
    %47 = vector.broadcast %46 : vector<1x16xf32> to vector<16x16xf32>
    %48 = arith.addf %43, %47 : vector<16x16xf32>
    %cst_40 = arith.constant dense<0xFF800000> : vector<16xf32>
    %49 = vector.multi_reduction <maximumf>, %48, %cst_40 [1] : vector<16x16xf32> to vector<16xf32>
    %50 = vector.shape_cast %49 : vector<16xf32> to vector<16x1xf32>
    %c0_i32 = arith.constant 0 : i32
    %51 = vector.broadcast %c0_i32 : i32 to vector<1x4xi32>
    %52 = arith.cmpi eq, %44, %51 : vector<1x4xi32>
    %53 = arith.extui %52 : vector<1x4xi1> to vector<1x4xi32>
    %54 = arith.sitofp %53 : vector<1x4xi32> to vector<1x4xf32>
    %55 = vector.broadcast %50 : vector<16x1xf32> to vector<16x4xf32>
    %56 = vector.broadcast %54 : vector<1x4xf32> to vector<16x4xf32>
    %57 = arith.mulf %55, %56 : vector<16x4xf32>
    %58 = arith.addf %45, %57 : vector<16x4xf32>
    %59 = vector.extract_strided_slice %33 {offsets = [1, 0], sizes = [1, 16], strides = [1, 1]} : vector<4x16xf32> to vector<1x16xf32>
    %60 = vector.broadcast %59 : vector<1x16xf32> to vector<16x16xf32>
    %61 = arith.addf %43, %60 : vector<16x16xf32>
    %cst_41 = arith.constant dense<0xFF800000> : vector<16xf32>
    %62 = vector.multi_reduction <maximumf>, %61, %cst_41 [1] : vector<16x16xf32> to vector<16xf32>
    %63 = vector.shape_cast %62 : vector<16xf32> to vector<16x1xf32>
    %c1_i32 = arith.constant 1 : i32
    %64 = vector.broadcast %c1_i32 : i32 to vector<1x4xi32>
    %65 = arith.cmpi eq, %44, %64 : vector<1x4xi32>
    %66 = arith.extui %65 : vector<1x4xi1> to vector<1x4xi32>
    %67 = arith.sitofp %66 : vector<1x4xi32> to vector<1x4xf32>
    %68 = vector.broadcast %63 : vector<16x1xf32> to vector<16x4xf32>
    %69 = vector.broadcast %67 : vector<1x4xf32> to vector<16x4xf32>
    %70 = arith.mulf %68, %69 : vector<16x4xf32>
    %71 = arith.addf %58, %70 : vector<16x4xf32>
    %72 = vector.extract_strided_slice %33 {offsets = [2, 0], sizes = [1, 16], strides = [1, 1]} : vector<4x16xf32> to vector<1x16xf32>
    %73 = vector.broadcast %72 : vector<1x16xf32> to vector<16x16xf32>
    %74 = arith.addf %43, %73 : vector<16x16xf32>
    %cst_42 = arith.constant dense<0xFF800000> : vector<16xf32>
    %75 = vector.multi_reduction <maximumf>, %74, %cst_42 [1] : vector<16x16xf32> to vector<16xf32>
    %76 = vector.shape_cast %75 : vector<16xf32> to vector<16x1xf32>
    %c2_i32 = arith.constant 2 : i32
    %77 = vector.broadcast %c2_i32 : i32 to vector<1x4xi32>
    %78 = arith.cmpi eq, %44, %77 : vector<1x4xi32>
    %79 = arith.extui %78 : vector<1x4xi1> to vector<1x4xi32>
    %80 = arith.sitofp %79 : vector<1x4xi32> to vector<1x4xf32>
    %81 = vector.broadcast %76 : vector<16x1xf32> to vector<16x4xf32>
    %82 = vector.broadcast %80 : vector<1x4xf32> to vector<16x4xf32>
    %83 = arith.mulf %81, %82 : vector<16x4xf32>
    %84 = arith.addf %71, %83 : vector<16x4xf32>
    %85 = vector.extract_strided_slice %33 {offsets = [3, 0], sizes = [1, 16], strides = [1, 1]} : vector<4x16xf32> to vector<1x16xf32>
    %86 = vector.broadcast %85 : vector<1x16xf32> to vector<16x16xf32>
    %87 = arith.addf %43, %86 : vector<16x16xf32>
    %cst_43 = arith.constant dense<0xFF800000> : vector<16xf32>
    %88 = vector.multi_reduction <maximumf>, %87, %cst_43 [1] : vector<16x16xf32> to vector<16xf32>
    %89 = vector.shape_cast %88 : vector<16xf32> to vector<16x1xf32>
    %c3_i32 = arith.constant 3 : i32
    %90 = vector.broadcast %c3_i32 : i32 to vector<1x4xi32>
    %91 = arith.cmpi eq, %44, %90 : vector<1x4xi32>
    %92 = arith.extui %91 : vector<1x4xi1> to vector<1x4xi32>
    %93 = arith.sitofp %92 : vector<1x4xi32> to vector<1x4xf32>
    %94 = vector.broadcast %89 : vector<16x1xf32> to vector<16x4xf32>
    %95 = vector.broadcast %93 : vector<1x4xf32> to vector<16x4xf32>
    %96 = arith.mulf %94, %95 : vector<16x4xf32>
    %97 = arith.addf %84, %96 : vector<16x4xf32>
    %98 = arith.truncf %97 : vector<16x4xf32> to vector<16x4xbf16>
    %cst_44 = arith.constant dense<0.000000e+00> : vector<16x4xf32>
    %99 = tpu.matmul %40, %98, %cst_44 {dimension_numbers = #tpu.dot_dimension_numbers<[0], [0], [1], [1], [0, 1, 1, 1], [], []>} : vector<16x16xbf16>, vector<16x4xbf16>, vector<16x4xf32> -> vector<16x4xf32>
    %100 = arith.subf %32, %99 : vector<16x4xf32>
    %101 = math.exp %100 : vector<16x4xf32>
    %102 = arith.truncf %101 : vector<16x4xf32> to vector<16x4xbf16>
    %cst_45 = arith.constant dense<0.000000e+00> : vector<16x4xf32>
    %103 = tpu.matmul %40, %102, %cst_45 {dimension_numbers = #tpu.dot_dimension_numbers<[1], [0], [0], [1], [0, 0, 1, 1], [], []>} : vector<16x16xbf16>, vector<16x4xbf16>, vector<16x4xf32> -> vector<16x4xf32>
    %104 = arith.truncf %103 : vector<16x4xf32> to vector<16x4xbf16>
    %cst_46 = arith.constant dense<0.000000e+00> : vector<16x4xf32>
    %105 = tpu.matmul %40, %104, %cst_46 {dimension_numbers = #tpu.dot_dimension_numbers<[0], [0], [1], [1], [0, 1, 1, 1], [], []>} : vector<16x16xbf16>, vector<16x4xbf16>, vector<16x4xf32> -> vector<16x4xf32>
    %106 = tpu.reciprocal %105 {approx = true} : vector<16x4xf32> -> vector<16x4xf32>
    %107 = arith.mulf %101, %106 : vector<16x4xf32>
    %108 = arith.truncf %107 : vector<16x4xf32> to vector<16x4xbf16>
    %cst_47 = arith.constant dense<0.000000e+00> : vector<16x32xf32>
    %109 = tpu.matmul %108, %30, %cst_47 {dimension_numbers = #tpu.dot_dimension_numbers<[1], [1], [0], [0], [0, 0, 1, 0], [], []>} : vector<16x4xbf16>, vector<32x4xbf16>, vector<16x32xf32> -> vector<16x32xf32>
    %110 = arith.mulf %109, %29 : vector<16x32xf32>
    %111 = arith.truncf %110 : vector<16x32xf32> to vector<16x32xbf16>
    %cst_48 = arith.constant dense<0.000000e+00> : vector<16x32xf32>
    %112 = tpu.matmul %40, %111, %cst_48 {dimension_numbers = #tpu.dot_dimension_numbers<[1], [0], [0], [1], [0, 0, 1, 1], [], []>} : vector<16x16xbf16>, vector<16x32xbf16>, vector<16x32xf32> -> vector<16x32xf32>
    %c0_49 = arith.constant 0 : index
    %c0_50 = arith.constant 0 : index
    %113 = vector.load %arg9[%c0_49, %c0_50] : memref<16x32xf32, #tpu.memory_space<vmem>>, vector<16x32xf32>
    tpu.vector_store %arg9[%c0_49, %c0_50], %112 {strides = array<i32>} : memref<16x32xf32, #tpu.memory_space<vmem>>, vector<16x32xf32>,
    return
  }
}

</mosaic_0001>

<bundles_post_ra>
// kernel: rel_mha_mp.1
= control target key start
LH: loop header
LB: loop body
LE: loop exit
PB: predicated region body
PF: predicated region fallthrough
CT: control target
= control target key end

     0   :  { %v1242_v1 = vmov 0.0   ;;  %vm1243_vm0 = vmmov 0   ;;  %vm56_vm1 = vcmask 261120   ;;  %s1505_s0 = inlined_call_operand.vmem [shape: s32[1,16], index: 0, kind: input, shape index: {}]   ;;  %s1506_s1 = inlined_call_operand.vmem [shape: bf16[16,32], index: 1, kind: input, shape index: {}]   ;;  %s1507_s2 = inlined_call_operand.vmem [shape: bf16[16,32], index: 2, kind: input, shape index: {}]   ;;  %s1508_s3 = inlined_call_operand.vmem [shape: bf16[64,32], index: 3, kind: input, shape index: {}]   ;;  %s1509_s4 = inlined_call_operand.vmem [shape: bf16[64,32], index: 4, kind: input, shape index: {}]   ;;  %s1510_s5 = inlined_call_operand.vmem [shape: bf16[64,32], index: 5, kind: input, shape index: {}]   ;;  %s1511_s6 = inlined_call_operand.vmem [shape: bf16[64,32], index: 6, kind: input, shape index: {}]   ;;  %s1512_s7 = inlined_call_operand.vmem [shape: f32[16,32], index: 7, kind: input, shape index: {}]   ;;  %s1513_s8 = inlined_call_operand.vmem [shape: bf16[32,4], index: 8, kind: input, shape index: {}]   ;;  %s1514_s9 = inlined_call_operand.hbm [shape: f32[16,32], index: 9, kind: output, shape index: {}]  }
   0x1   :  { %v1192_v0 = vld [vmem:[%s1509_s4] sm:$0xff]   ;;  %1075 = vmatprep.subr.bf16.mxu0 %v1242_v1  ;;  %1083 = vmatprep.subr.bf16.mxu1 %v1242_v1  ;;  %v1194_v3 = vld [vmem:[%s1509_s4 + $0x8] sm:$0xff]   ;;  %v1200_v11 = vld [vmem:[%s1509_s4 + $0x10] sm:$0xff]  }
   0x2   :  { %v1193_v2 = vld [vmem:[%s1508_s3] sm:$0xff]   ;;  %1076 = vmatpush3.bf16.msra.mxu0 %v1192_v0  ;;  %1079 = vmatprep.mubr.msk.bf16.mxu0 %vm1243_vm0, %v1242_v1  ;;  %v1195_v4 = vld [vmem:[%s1508_s3 + $0x8] sm:$0xff]   ;;  %v1201_v12 = vld [vmem:[%s1508_s3 + $0x10] sm:$0xff]  }
   0x3   :  { %1084 = vmatpush3.bf16.msra.mxu1 %v1193_v2  ;;  %1077 = vmatprep.subr.bf16.mxu0 %v1242_v1  ;;  %v35_v5 = vld [vmem:[%s1507_s2] sm:$0xf]  ;;  %v1198_v9 = vld [vmem:[%s1510_s5 + $0x8] sm:$0xff]   ;;  %v1202_v13 = vld [vmem:[%s1509_s4 + $0x18] sm:$0xff]  }
   0x4   :  { %1085 = vmatprep.subr.bf16.mxu1 %v1242_v1  ;;  %1087 = vmatprep.mubr.msk.bf16.mxu1 %vm1243_vm0, %v1242_v1  ;;  %v34_v6 = vld [vmem:[%s1506_s1] sm:$0xf]  ;;  %v1199_v10 = vld [vmem:[%s1511_s6 + $0x8] sm:$0xff]   ;;  %v1203_v15 = vld [vmem:[%s1508_s3 + $0x18] sm:$0xff]  }
   0x5   :  { %v1196_v7 = vld [vmem:[%s1510_s5] sm:$0xff]  }
   0x6   :  { %1078 = vmatpush3.bf16.msra.mxu0 %v1194_v3  ;;  %v1197_v8 = vld [vmem:[%s1511_s6] sm:$0xff]  }
   0x7   :  { %1086 = vmatpush3.bf16.msra.mxu1 %v1195_v4  ;;  %1091 = vmatprep.subr.bf16.mxu0 %v1242_v1  ;;  %v1362_v14 = vld [vmem:[%s1513_s8] sm:$0xff]  }
   0x8   :  { %1099 = vmatprep.subr.bf16.mxu1 %v1242_v1 }
   0x9   :  { %1080 = vmatmul.mubr.msk.bf16.vlgmr.msra.gmra.mrb[0].mxu0 %vm56_vm1, %v35_v5 }
   0xa   :  { %1088 = vmatmul.mubr.msk.bf16.vlgmr.msra.gmra.mrb[0].mxu1 %vm56_vm1, %v34_v6  ;;  %1092 = vmatpush3.bf16.msra.mxu0 %v1196_v7 }
   0xb   :  { %1100 = vmatpush3.bf16.msra.mxu1 %v1197_v8  ;;  %1093 = vmatprep.subr.bf16.mxu0 %v1242_v1 }
   0xc   :  { %1101 = vmatprep.subr.bf16.mxu1 %v1242_v1  ;;  %1095 = vmatprep.mubr.msk.bf16.mxu0 %vm1243_vm0, %v1242_v1 }
   0xd   :  { %1103 = vmatprep.mubr.msk.bf16.mxu1 %vm1243_vm0, %v1242_v1 }
   0xe   :  { %1094 = vmatpush3.bf16.msra.mxu0 %v1198_v9 }
   0xf   :  { %1102 = vmatpush3.bf16.msra.mxu1 %v1199_v10  ;;  %1107 = vmatprep.subr.bf16.mxu0 %v1242_v1 }
  0x10   :  { %1115 = vmatprep.subr.bf16.mxu1 %v1242_v1 }
  0x11   :  { %1096 = vmatmul.mubr.msk.bf16.vlgmr.msra.gmra.mrb[4].mxu0 %vm56_vm1, %v35_v5 }
  0x12   :  { %1104 = vmatmul.mubr.msk.bf16.vlgmr.msra.gmra.mrb[4].mxu1 %vm56_vm1, %v34_v6  ;;  %1108 = vmatpush3.bf16.msra.mxu0 %v1200_v11 }
  0x13   :  { %1116 = vmatpush3.bf16.msra.mxu1 %v1201_v12  ;;  %1109 = vmatprep.subr.bf16.mxu0 %v1242_v1 }
  0x14   :  { %14 = vsyncpa [#allocation3], 0  ;;  %1117 = vmatprep.subr.bf16.mxu1 %v1242_v1  ;;  %1111 = vmatprep.mubr.msk.bf16.mxu0 %vm1243_vm0, %v1242_v1  ;;  %v1377_v16 = vld [vmem:[%s1513_s8 + $0x8] sm:$0xff]   ;;  %v269_v17 = vld [vmem:[%s1507_s2 + $0x4] sm:$0xf]  ;;  %v627_v62 = vlaneseq  ;;  %vm652_vm4 = vcmask 130048  }
  0x15   :  { %1119 = vmatprep.mubr.msk.bf16.mxu1 %vm1243_vm0, %v1242_v1  ;;  %568 = vxpose.xlu0.c.b16.start [1/2] (short) (narrow) %v1362_v14, 16  ;;  %v1204_v18 = vld [vmem:[%s1510_s5 + $0x10] sm:$0xff]   ;;  %v268_v19 = vld [vmem:[%s1506_s1 + $0x4] sm:$0xf]  ;;  %v1206_v21 = vld [vmem:[%s1510_s5 + $0x18] sm:$0xff]   ;;  %vm882_vm9 = vcmask 31744  }
  0x16   :  { %1110 = vmatpush3.bf16.msra.mxu0 %v1202_v13  ;;  %v1205_v20 = vld [vmem:[%s1511_s6 + $0x10] sm:$0xff]   ;;  %v1207_v22 = vld [vmem:[%s1511_s6 + $0x18] sm:$0xff]   ;;  %v628_v63 = vshrl.u32 %v627_v62, 7  ;;  %v1023_v4 = vld [vmem:[%s1505_s0] ss:$0 sm:$0xff]  ;;  %s1245_s30 = smov [#allocation2]  }
  0x17   :  { %1118 = vmatpush3.bf16.msra.mxu1 %v1203_v15  ;;  %1123 = vmatprep.subr.bf16.mxu0 %v1242_v1  ;;  %v1244_v11 = vmov -1e+30   ;;  %s984_s10 = sshll.u32 %s1245_s30, 4  ;;  %s985_s10 = int_to_ptr.vmem [resolvable:$true] %s984_s10 }
  0x18   :  { %1131 = vmatprep.subr.bf16.mxu1 %v1242_v1  ;;  %v629_v6 = vadd.s32 8, %v628_v63  ;;  %v668_v7 = vsub.s32 1, %v628_v63  ;;  %vm635_vm2 = vcmp.eq.s32.totalorder %v1023_v4, %v628_v63  ;;  %v648_v8 = vsub.s32 0, %v628_v63  ;;  %p1223_p1 = scmp.lt.s32.totalorder %s985_s10, %s985_s10 }
  0x19   :  { %1112 = vmatmul.mubr.msk.bf16.vlgmr.msra.gmra.mrb[8].mxu0 %vm56_vm1, %v269_v17  ;;  %569 = vxpose.xlu0.c.b16.end [2/2] (short) (narrow) %v1377_v16, 16  ;;  %v706_v9 = vsub.s32 3, %v628_v63  ;;  %v642_v12 = vsel %vm635_vm2, 0.0, %v1244_v11 }
  0x1a   :  { %1120 = vmatmul.mubr.msk.bf16.vlgmr.msra.gmra.mrb[8].mxu1 %vm56_vm1, %v268_v19  ;;  %1124 = vmatpush3.bf16.msra.mxu0 %v1204_v18  ;;  %vm636_vm3 = vcmp.eq.s32.totalorder %v1023_v4, %v629_v6 }
  0x1b   :  { %1132 = vmatpush3.bf16.msra.mxu1 %v1205_v20  ;;  %1125 = vmatprep.subr.bf16.mxu0 %v1242_v1  ;;  %v643_v20 = vsel %vm636_vm3, 0.0, %v1244_v11 }
  0x1c   :  { %1133 = vmatprep.subr.bf16.mxu1 %v1242_v1  ;;  %1127 = vmatprep.mubr.msk.bf16.mxu0 %vm1243_vm0, %v1242_v1 }
  0x1d   :  { %1135 = vmatprep.mubr.msk.bf16.mxu1 %vm1243_vm0, %v1242_v1 }
  0x1e   :  { %1126 = vmatpush3.bf16.msra.mxu0 %v1206_v21 }
  0x1f   :  { %1134 = vmatpush3.bf16.msra.mxu1 %v1207_v22  ;;  %1139 = vmatprep.subr.bf16.mxu0 %v1242_v1 }
  0x20   :  { %1147 = vmatprep.subr.bf16.mxu1 %v1242_v1 }
  0x21   :  { %1128 = vmatmul.mubr.msk.bf16.vlgmr.msra.gmra.mrb[12].mxu0 %vm56_vm1, %v269_v17 }
  0x22   :  { %1136 = vmatmul.mubr.msk.bf16.vlgmr.msra.gmra.mrb[12].mxu1 %vm56_vm1, %v268_v19  ;;  %1140 = vmatpush3.bf16.msra.mxu0 %v1362_v14 }
  0x23   :  { %1141 = vmatprep.subr.bf16.mxu0 %v1242_v1  ;;  %1143 = vmatprep.mubr.msk.bf16.mxu0 %vm1243_vm0, %v1242_v1 }
  0x24   :  { %1149 = vmatprep.mubr.msk.bf16.mxu1 %vm1243_vm0, %v1242_v1 }
  0x26   :  { %1142 = vmatpush3.bf16.msra.mxu0 %v1377_v16 }
  0x27   :  { %1153 = vmatprep.subr.bf16.mxu0 %v1242_v1 }
  0x7b   :  { %v576_v61 = vpop.trf.xlu0 }
  0xdc   :  { %v94_v23 = vpop.f32.mrb[0].mxu0 }
  0xdd   :  { %v149_v24 = vpop.f32.mrb[0].mxu1  ;;  %v1081_v25 = vpop.f32.mrb[1].mxu0 }
  0xde   :  { %v1420_v26 = vadd.f32 %v149_v24, %v94_v23  ;;  %v1089_v27 = vpop.f32.mrb[1].mxu1  ;;  %v97_v28 = vpop.f32.mrb[2].mxu0  ;;  %v687_v24 = vsub.s32 2, %v628_v63 }
  0xdf   :  { %v152_v29 = vpop.f32.mrb[2].mxu1  ;;  %v1082_v30 = vpop.f32.mrb[3].mxu0 }
  0xe0   :  { %v1090_v31 = vpop.f32.mrb[3].mxu1 }
  0xe4   :  { %v205_v32 = vpop.f32.mrb[4].mxu0 }
  0xe5   :  { %v261_v33 = vpop.f32.mrb[4].mxu1  ;;  %v1097_v34 = vpop.f32.mrb[5].mxu0 }
  0xe6   :  { %v267_v35 = vmul.f32 %v261_v33, %v205_v32  ;;  %v1105_v36 = vpop.f32.mrb[5].mxu1  ;;  %v208_v37 = vpop.f32.mrb[6].mxu0 }
  0xe7   :  { %v264_v38 = vpop.f32.mrb[6].mxu1  ;;  %v1098_v39 = vpop.f32.mrb[7].mxu0 }
  0xe8   :  { %v1106_v40 = vpop.f32.mrb[7].mxu1 }
  0xec   :  { %v327_v41 = vpop.f32.mrb[8].mxu0 }
  0xed   :  { %v382_v42 = vpop.f32.mrb[8].mxu1  ;;  %v1113_v43 = vpop.f32.mrb[9].mxu0 }
  0xee   :  { %v1422_v44 = vadd.f32 %v382_v42, %v327_v41  ;;  %v1121_v45 = vpop.f32.mrb[9].mxu1  ;;  %v330_v46 = vpop.f32.mrb[10].mxu0  ;;  %v1024_v41 = vsel %vm635_vm2, 1.0, %v1242_v1  ;;  %v1025_v42 = vsel %vm636_vm3, 1.0, %v1242_v1 }
  0xef   :  { %v385_v47 = vpop.f32.mrb[10].mxu1  ;;  %v1114_v48 = vpop.f32.mrb[11].mxu0  ;;  %v1453_v43 = vpack.c.bf16 %v1025_v42, %v1024_v41 }
  0xf0   :  { %v1122_v49 = vpop.f32.mrb[11].mxu1  ;;  %v645_v47 = vand.u32 127, %v627_v62 }
  0xf2   :  { %vm678_vm5 = vcmp.eq.s32.totalorder %v645_v47, 1  ;;  %vm659_vm6 = vcmp.eq.s32.totalorder %v645_v47, 0  ;;  %vm697_vm7 = vcmp.eq.s32.totalorder %v645_v47, 2  ;;  %vm716_vm8 = vcmp.eq.s32.totalorder %v645_v47, 3 }
  0xf3   :  { %v1027_v49 = vsel %vm678_vm5, 1.0, %v1242_v1  ;;  %v1029_v62 = vsel %vm716_vm8, 1.0, %v1242_v1 }
  0xf4   :  { %v438_v50 = vpop.f32.mrb[12].mxu0 }
  0xf5   :  { %v494_v51 = vpop.f32.mrb[12].mxu1  ;;  %v1129_v52 = vpop.f32.mrb[13].mxu0 }
  0xf6   :  { %v500_v53 = vmul.f32 %v494_v51, %v438_v50  ;;  %v1137_v54 = vpop.f32.mrb[13].mxu1  ;;  %v441_v55 = vpop.f32.mrb[14].mxu0  ;;  %v1026_v51 = vsel %vm659_vm6, 1.0, %v1242_v1 }
  0xf7   :  { %v497_v56 = vpop.f32.mrb[14].mxu1  ;;  %v1130_v57 = vpop.f32.mrb[15].mxu0  ;;  %v1028_v54 = vsel %vm697_vm7, 1.0, %v1242_v1 }
  0xf8   :  { %v511_v58 = vpack.c.bf16 %v500_v53, %v267_v35  ;;  %v1138_v59 = vpop.f32.mrb[15].mxu1 }
  0xfa   :  { %1144 = vmatmul.mubr.msk.bf16.vlgmr.msra.gmra.mrb[16].mxu0 %vm56_vm1, %v511_v58  ;;  %v525_v60 = vsel %vm56_vm1, %v511_v58, 0 }
  0xfb   :  { %1148 = vmatpush3.bf16.xpose.msra.mxu1 %v525_v60  ;;  %1155 = vmatprep.mubr.msk.bf16.mxu0 %vm1243_vm0, %v1242_v1 }
  0xfc   :  { %1159 = vmatprep.subr.bf16.mxu1 %v1242_v1 }
 0x102   :  { %1150 = vmatmul.mubr.msk.bf16.vlgmr.msra.gmra.mrb[16].mxu1 %vm56_vm1, %v576_v61 }
 0x103   :  { %1161 = vmatprep.mubr.msk.bf16.mxu1 %vm1243_vm0, %v1242_v1 }
 0x1cd   :  { %v1432_v0 = vpop.f32.mrb[16].mxu0 }
 0x1ce   :  { %v1145_v2 = vpop.f32.mrb[17].mxu0 }
 0x1cf   :  { %v1434_v3 = vpop.f32.mrb[18].mxu0 }
 0x1d0   :  { %v1146_v5 = vpop.f32.mrb[19].mxu0 }
 0x1d5   :  { %v621_v10 = vpop.f32.mrb[16].mxu1 }
 0x1d6   :  { %v1151_v13 = vpop.f32.mrb[17].mxu1  ;;  %v669_v15 = vrot.slane %v621_v10, %v668_v7  ;;  %v649_v17 = vrot.slane %v621_v10, %v648_v8  ;;  %v707_v18 = vrot.slane %v621_v10, %v706_v9  ;;  %v688_v33 = vrot.slane %v621_v10, %v687_v24 }
 0x1d7   :  { %v624_v19 = vpop.f32.mrb[18].mxu1 }
 0x1d8   :  { %v1152_v21 = vpop.f32.mrb[19].mxu1  ;;  %v670_v22 = vadd.f32 %v669_v15, %v642_v12  ;;  %v650_v23 = vadd.f32 %v649_v17, %v642_v12  ;;  %v709_v28 = vadd.f32 %v707_v18, %v643_v20  ;;  %v651_v29 = vadd.f32 %v649_v17, %v643_v20 }
 0x1d9   :  { %v671_v32 = vadd.f32 %v669_v15, %v643_v20  ;;  %v689_v35 = vadd.f32 %v688_v33, %v642_v12  ;;  %v690_v37 = vadd.f32 %v688_v33, %v643_v20  ;;  %v708_v39 = vadd.f32 %v707_v18, %v642_v12 }
 0x1da   :  { %v672_v25 = vsel %vm652_vm4, %v670_v22, -inf  ;;  %v653_v27 = vsel %vm652_vm4, %v650_v23, -inf  ;;  %v713_v30 = vsel %vm652_vm4, %v709_v28, -inf  ;;  %v656_v31 = vsel %vm652_vm4, %v651_v29, -inf }
 0x1db   :  { %673 = vmax.xlane.f32.xlu0 %v672_v25  ;;  %654 = vmax.xlane.f32.xlu1 %v653_v27  ;;  %v675_v34 = vsel %vm652_vm4, %v671_v32, -inf  ;;  %v691_v36 = vsel %vm652_vm4, %v689_v35, -inf  ;;  %v694_v38 = vsel %vm652_vm4, %v690_v37, -inf  ;;  %v710_v40 = vsel %vm652_vm4, %v708_v39, -inf }
 0x1df   :  { %714 = vmax.xlane.f32.xlu0 %v713_v30  ;;  %657 = vmax.xlane.f32.xlu1 %v656_v31  ;;  %v887_v30 = vsel %vm882_vm9, %v1362_v14, 0  ;;  %v890_v31 = vsel %vm882_vm9, %v1377_v16, 0  ;;  %v502_v14 = vld [vmem:[%s1512_s7 + $0x8] sm:$0xff] }
 0x1e0   :  { %v504_v41 = vadd.f32 %v502_v14, %v1422_v44 }
 0x1e3   :  { %676 = vmax.xlane.f32.xlu1 %v675_v34 }
 0x1e7   :  { %692 = vmax.xlane.f32.xlu1 %v691_v36 }
 0x1eb   :  { %695 = vmax.xlane.f32.xlu1 %v694_v38 }
 0x1ef   :  { %711 = vmax.xlane.f32.xlu1 %v710_v40 }
 0x21c   :  { %724 = vxpose.xlu1.c.b16.start.end [1/1] (short) (narrow) %v1453_v43, 16 }
 0x268   :  { %v655_v45 = vpop.xlane.xlu1 %654  ;;  %v674_v50 = vpop.xlane.xlu0 %673 }
 0x269   :  { %v681_v55 = vmul.f32 %v1027_v49, %v674_v50  ;;  %v662_v56 = vmul.f32 %v1026_v51, %v655_v45 }
 0x26b   :  { %v683_v2 = vadd.f32 %v681_v55, %v662_v56 }
 0x26c   :  { %v658_v46 = vpop.xlane.xlu1 %657  ;;  %v715_v63 = vpop.xlane.xlu0 %714 }
 0x26d   :  { %v663_v57 = vmul.f32 %v1026_v51, %v658_v46  ;;  %v720_v6 = vmul.f32 %v1029_v62, %v715_v63 }
 0x270   :  { %v677_v48 = vpop.xlane.xlu1 %676 }
 0x271   :  { %v682_v53 = vmul.f32 %v1027_v49, %v677_v48  ;;  %v506_v48 = vmax.f32 %v504_v41, 0.0 }
 0x273   :  { %v684_v59 = vadd.f32 %v682_v53, %v663_v57 }
 0x274   :  { %v693_v52 = vpop.xlane.xlu1 %692 }
 0x275   :  { %v700_v60 = vmul.f32 %v1028_v54, %v693_v52 }
 0x277   :  { %v702_v7 = vadd.f32 %v700_v60, %v683_v2 }
 0x278   :  { %v696_v58 = vpop.xlane.xlu1 %695 }
 0x279   :  { %v701_v61 = vmul.f32 %v1028_v54, %v696_v58 }
 0x27b   :  { %v703_v4 = vadd.f32 %v701_v61, %v684_v59 }
 0x27c   :  { %v712_v5 = vpop.xlane.xlu1 %711 }
 0x27d   :  { %v719_v8 = vmul.f32 %v1029_v62, %v712_v5  ;;  %v722_v9 = vadd.f32 %v720_v6, %v703_v4 }
 0x27f   :  { %v721_v10 = vadd.f32 %v719_v8, %v702_v7 }
 0x281   :  { %v723_v11 = vpack.c.bf16 %v722_v9, %v721_v10 }
 0x282   :  { %v732_v12 = vpop.trf.xlu1 }
 0x283   :  { %1154 = vmatpush3.bf16.msra.mxu0 %v723_v11 }
 0x284   :  { %1165 = vmatprep.subr.bf16.mxu0 %v1242_v1 }
 0x286   :  { %1156 = vmatmul.mubr.msk.bf16.vlgmr.msra.gmra.mrb[20].mxu0 %vm652_vm4, %v732_v12 }
 0x287   :  { %1167 = vmatprep.mubr.msk.bf16.mxu0 %vm1243_vm0, %v1242_v1 }
 0x359   :  { %v777_v13 = vpop.f32.mrb[20].mxu0 }
 0x35a   :  { %v784_v15 = vsub.f32 %v1432_v0, %v777_v13  ;;  %v1157_v17 = vpop.f32.mrb[21].mxu0 }
 0x35b   :  { %v780_v18 = vpop.f32.mrb[22].mxu0 }
 0x35c   :  { %v786_v19 = vmul.f32 1.442695, %v784_v15  ;;  %v785_v20 = vsub.f32 %v1434_v3, %v780_v18  ;;  %v1158_v21 = vpop.f32.mrb[23].mxu0 }
 0x35e   :  { %v788_v22 = vmul.f32 1.442695, %v785_v20  ;;  %1210 = vpow2.f32 %v786_v19 }
 0x360   :  { %1212 = vpow2.f32 %v788_v22 }
 0x368   :  { %v1211_v23 = vpop.eup %1210 }
 0x36a   :  { %v1213_v24 = vpop.eup %1212 }
 0x36b   :  { %v790_v25 = vpack.c.bf16 %v1213_v24, %v1211_v23 }
 0x36d   :  { %1160 = vmatpush3.bf16.msra.mxu1 %v790_v25 }
 0x36e   :  { %1171 = vmatprep.subr.bf16.mxu1 %v1242_v1 }
 0x370   :  { %1162 = vmatmul.mubr.msk.bf16.vlgmr.msra.gmra.mrb[20].mxu1 %vm652_vm4, %v1453_v43 }
 0x371   :  { %1175 = vmatprep.mubr.msk.bf16.mxu1 %vm1243_vm0, %v1242_v1 }
 0x376   :  { %1172 = vmatpush3.bf16.xpose.msra.mxu1 %v887_v30 }
 0x377   :  { %1173 = vmatprep.subr.bf16.mxu1 %v1242_v1 }
 0x37e   :  { %1174 = vmatpush3.bf16.xpose.msra.mxu1 %v890_v31 }
 0x443   :  { %v828_v0 = vpop.f32.mrb[20].mxu1 }
 0x444   :  { %v1163_v27 = vpop.f32.mrb[21].mxu1 }
 0x445   :  { %v831_v28 = vpop.f32.mrb[22].mxu1 }
 0x446   :  { %v835_v3 = vpack.c.bf16 %v831_v28, %v828_v0  ;;  %v1164_v29 = vpop.f32.mrb[23].mxu1 }
 0x448   :  { %1166 = vmatpush3.bf16.msra.mxu0 %v835_v3 }
 0x449   :  { %1179 = vmatprep.subr.bf16.mxu0 %v1242_v1 }
 0x44b   :  { %1168 = vmatmul.mubr.msk.bf16.vlgmr.msra.gmra.mrb[24].mxu0 %vm652_vm4, %v732_v12 }
 0x44c   :  { %1181 = vmatprep.mubr.msk.bf16.mxu0 %vm1243_vm0, %v1242_v1  ;;  %v501_v1 = vld [vmem:[%s1512_s7] sm:$0xff]  ;;  %s1218_s7 = scalar_lea.vmem %s985_s10, 256 }
 0x44d   :  { %v503_v16 = vadd.f32 %v501_v1, %v1420_v26  ;;  %p1219_p0 = scmp.ne.s32.totalorder %s985_s10, %s1218_s7  ;;  %p1224_p2 = scmp.lt.s32.totalorder %s1218_s7, %s1218_s7 }
 0x44f   :  { %v505_v42 = vmax.f32 %v503_v16, 0.0  ;;  %p1225_p3 = por %p1224_p2, %p1223_p1 }
 0x451   :  { %p1226_p4 = pnand %p1225_p3, %p1219_p0 }
 0x51e   :  { %v870_v32 = vpop.f32.mrb[24].mxu0 }
 0x51f   :  { %1214 = vrcp.f32 %v870_v32  ;;  %v1169_v33 = vpop.f32.mrb[25].mxu0 }
 0x520   :  { %v873_v34 = vpop.f32.mrb[26].mxu0 }
 0x521   :  { %1216 = vrcp.f32 %v873_v34  ;;  %v1170_v35 = vpop.f32.mrb[27].mxu0 }
 0x529   :  { %v1215_v36 = vpop.eup %1214 }
 0x52a   :  { %v879_v38 = vmul.f32 %v1215_v36, %v1211_v23 }
 0x52b   :  { %v1217_v37 = vpop.eup %1216 }
 0x52c   :  { %v880_v39 = vmul.f32 %v1217_v37, %v1213_v24 }
 0x52e   :  { %v881_v40 = vpack.c.bf16 %v880_v39, %v879_v38 }
 0x530   :  { %1176 = vmatmul.mubr.msk.bf16.vlgmr.msra.gmra.mrb[24].mxu1 %vm882_vm9, %v881_v40 }
 0x603   :  { %v926_v45 = vpop.f32.mrb[24].mxu1 }
 0x604   :  { %v933_v46 = vmul.f32 %v926_v45, %v505_v42  ;;  %v1177_v47 = vpop.f32.mrb[25].mxu1 }
 0x605   :  { %v929_v49 = vpop.f32.mrb[26].mxu1 }
 0x606   :  { %v934_v50 = vmul.f32 %v929_v49, %v506_v48  ;;  %v1178_v51 = vpop.f32.mrb[27].mxu1 }
 0x608   :  { %v935_v52 = vpack.c.bf16 %v934_v50, %v933_v46 }
 0x60a   :  { %1180 = vmatpush3.bf16.msra.mxu0 %v935_v52 }
 0x60d   :  { %1182 = vmatmul.mubr.msk.bf16.vlgmr.msra.gmra.mrb[28].mxu0 %vm652_vm4, %v1453_v43 }
 0x6e0   :  { %v970_v53 = vpop.f32.mrb[28].mxu0 }
 0x6e1   :  { %977 = vst.msk [vmem:[#allocation2] sm:$0xff] %vm56_vm1, %v970_v53  ;;  %v1183_v26 = vpop.f32.mrb[29].mxu0 }
 0x6e2   :  { %v973_v44 = vpop.f32.mrb[30].mxu0 }
 0x6e3   :  { %978 = vst.msk [vmem:[#allocation2 + $0x8] sm:$0xff] %vm56_vm1, %v973_v44  ;;  %v1184_v54 = vpop.f32.mrb[31].mxu0 }
 0x6e4   :  { %1229 = shalt.err (!%p1226_p4)
}
 0x6e5   :  { %s1230_s13 = scalar_lea.hbm %s1514_s9, 256 }
 0x6e6   :  { %p1231_p5 = scmp.ne.s32.totalorder %s1514_s9, %s1230_s13  ;;  %p1234_p6 = scmp.lt.u32.totalorder %s1230_s13, %s1514_s9 }
 0x6e8   :  { %p1236_p7 = pnand %p1234_p6, %p1231_p5 }
 0x6ea   :  { %1239 = shalt.err (!%p1236_p7)
}
 0x6eb   :  { %s1246_s4 = smov 128   ;;  %s1247_s18 = smov 8  }
 0x6ec   :  { %990 = dma.vmem_to_hbm [thread:$0]  %s985_s10, 256, %s1514_s9, [#allocation3], %s1246_s4, %s1246_s4, %s1247_s18  }
 0x6ed   :  { %1240 = dma.done.wait [#allocation3], 256  }
 0x6ee   :  { %1241 = vsyncadd [#allocation3], 4294967040 }
 0x6ef   :  { %994 = vsyncpa [#allocation3], 1 }

</bundles_post_ra>
